<compile_context>
chip_gen: v7x
topology: tpu7x:2x2x1
jax: 0.10.0
libtpu: 0.0.40
codegen_flags: <defaults>
</compile_context>

<pallas_src>
import functools

import jax
import jax.numpy as jnp
from jax import lax
from jax.experimental import pallas as pl
from jax.experimental.pallas import tpu as pltpu


def _lstm_chunk_kernel(emb_ref, wih_ref, whh_ref, bias_ref, out_ref,
                       h_ref, c_ref, xp_ref, *, B, Z, T, Tc):
    """One time-chunk of the LSTM recurrence.

    emb_ref : (Tc*B, H)  streamed embedding rows of this chunk
                         (time-major, row = local_t * B + b), bf16/f32
    wih_ref : (H, Gp)    resident W_ih^T, gate-packed (Gp = roundup(4Z, 128))
    whh_ref : (Z, Gp)    resident W_hh^T, gate-packed
    bias_ref: (1, Gp)    resident (b_ih + b_hh), f32
    out_ref : (B, Z)     h of the final timestep (written on the last chunk)
    h_ref/c_ref : (B, Z) f32 recurrent state (persists across grid steps)
    xp_ref  : (Tc*B, Gp) f32 per-chunk input-projection scratch
    """
    chunk = pl.program_id(0)
    n_chunks = pl.num_programs(0)
    Gp = wih_ref.shape[-1]

    # h0 = c0 = 0, as in the PyTorch module.
    @pl.when(chunk == 0)
    def _():
        h_ref[...] = jnp.zeros_like(h_ref)
        c_ref[...] = jnp.zeros_like(c_ref)

    # ---- Chunk-level input projection: ONE well-shaped MXU matmul (M = Tc*B),
    # hoisted off the serial recurrence.  Bias is folded in here.
    xp_ref[...] = (
        jnp.dot(emb_ref[...], wih_ref[...], preferred_element_type=jnp.float32)
        + bias_ref[...]
    )

    # Lane mask selecting the cell-candidate ('g') gate block, hoisted out of
    # the loop.  Gate packing order along lanes is PyTorch's (i, f, g, o).
    lane = lax.broadcasted_iota(jnp.int32, (B, Gp), 1)
    g_mask = (lane >= 2 * Z) & (lane < 3 * Z)

    def step(s, carry):
        h, c = carry
        start = s * B
        if B % 8 == 0:
            start = pl.multiple_of(start, 8)
        xp = xp_ref[pl.ds(start, B), :]                                # (B, Gp)
        # Serial critical path: tiny matmul h @ W_hh^T.  RHS is streamed from
        # VMEM each step (no register hoist -> no spills across the unroll).
        gates = xp + jnp.dot(h.astype(whh_ref.dtype), whh_ref[...],
                             preferred_element_type=jnp.float32)       # (B, Gp)
        # One packed tanh for all four gates:
        #   i/f/o lanes: sigmoid(x) = 0.5*(1 + tanh(x/2));  g lanes: tanh(x).
        t = jnp.tanh(jnp.where(g_mask, gates, 0.5 * gates))
        act = jnp.where(g_mask, t, 0.5 * (t + 1.0))
        i_g = act[:, 0 * Z:1 * Z]
        f_g = act[:, 1 * Z:2 * Z]
        g_g = act[:, 2 * Z:3 * Z]
        o_g = act[:, 3 * Z:4 * Z]
        c_new = f_g * c + i_g * g_g
        h_new = o_g * jnp.tanh(c_new)
        if T % Tc != 0:
            # Masked tail: steps past the true sequence length are no-ops.
            valid = (chunk * Tc + s) < T
            h_new = jnp.where(valid, h_new, h)
            c_new = jnp.where(valid, c_new, c)
        return h_new, c_new

    # Bounded unroll: amortizes loop overhead without blowing vregs / I-cache
    # when Z is large.
    h, c = lax.fori_loop(0, Tc, step, (h_ref[...], c_ref[...]),
                         unroll=min(Tc, 8))
    h_ref[...] = h
    c_ref[...] = c

    # Emit only the last timestep's hidden state (lstm_out[:, -1, :]).
    @pl.when(chunk == n_chunks - 1)
    def _():
        out_ref[...] = h.astype(out_ref.dtype)


def lstm_embed_forward(x, embedding, w_ih, w_hh, b_ih, b_hh, *,
                       compute_dtype=jnp.bfloat16):
    """x: (B, T) int32 token ids.  Returns (B, z_dim) f32 == lstm_out[:, -1, :].

    compute_dtype: dtype of the streamed embedding chunk and the resident
    W_ih^T / W_hh^T (bf16 halves HBM traffic / VMEM residency and doubles
    MXU rate).  Matmul accumulation and the h/c state are always f32.
    """
    B, T = x.shape
    V, H = embedding.shape
    Z = w_hh.shape[1]
    G = 4 * Z
    Gp = ((G + 127) // 128) * 128      # pack all 4 gates; pad only 4Z -> x128 lanes

    # -------- glue (plain JAX; runs once, no vocab-wide projection table) -----
    # Gather ONLY the B*T used embedding rows, time-major.
    # TODO(synk): for very long T, gather these rows in-kernel (scalar-prefetched
    # token ids + manual DMA) to avoid writing + re-reading this slab in HBM.
    emb_seq = jnp.take(embedding, x.T, axis=0).astype(compute_dtype)   # (T, B, H)

    # Time tiling: grid = cdiv(T, Tc) with a zero-padded, in-kernel-masked tail
    # (no Tc=1 collapse for prime/awkward T).
    Tc = min(T, 32)
    n_chunks = pl.cdiv(T, Tc)
    Tp = n_chunks * Tc
    if Tp != T:
        emb_seq = jnp.pad(emb_seq, ((0, Tp - T), (0, 0), (0, 0)))
    emb_flat = emb_seq.reshape(Tp * B, H)                              # row = t*B + b

    # Gate-packed weights (PyTorch gate order i, f, g, o along the 4Z axis);
    # padded lanes [4Z, Gp) are zero and never read by the kernel.
    wih_p = jnp.zeros((H, Gp), compute_dtype).at[:, :G].set(
        w_ih.T.astype(compute_dtype))
    whh_p = jnp.zeros((Z, Gp), compute_dtype).at[:, :G].set(
        w_hh.T.astype(compute_dtype))
    bias_p = jnp.zeros((1, Gp), jnp.float32).at[0, :G].set(
        (b_ih + b_hh).astype(jnp.float32))

    # The batch is deliberately NOT split into grid blocks: on 1-TensorCore
    # chips (v5e/v6e) multiple batch blocks would rerun the serial recurrence.
    # VMEM per chunk (all small here): double-buffered emb chunk
    # 2*Tc*B*H*itemsize + resident weights (H+Z)*Gp*itemsize + bias
    # + xp scratch Tc*B*Gp*4 + h/c/out.  For very large Z keep weights bf16
    # (default) and raise vmem_limit_bytes / tile the Gp axis if needed.

    kernel = functools.partial(_lstm_chunk_kernel, B=B, Z=Z, T=T, Tc=Tc)

    out = pl.pallas_call(
        kernel,
        out_shape=jax.ShapeDtypeStruct((B, Z), jnp.float32),
        grid=(n_chunks,),
        in_specs=[
            pl.BlockSpec((Tc * B, H), lambda c: (c, 0)),   # streamed embedding chunk
            pl.BlockSpec((H, Gp), lambda c: (0, 0)),       # resident W_ih^T
            pl.BlockSpec((Z, Gp), lambda c: (0, 0)),       # resident W_hh^T
            pl.BlockSpec((1, Gp), lambda c: (0, 0)),       # resident bias
        ],
        out_specs=pl.BlockSpec((B, Z), lambda c: (0, 0)),  # resident output
        scratch_shapes=[
            pltpu.VMEM((B, Z), jnp.float32),               # h state
            pltpu.VMEM((B, Z), jnp.float32),               # c state
            pltpu.VMEM((Tc * B, Gp), jnp.float32),         # per-chunk x projection
        ],
        compiler_params=pltpu.CompilerParams(
            dimension_semantics=("arbitrary",),            # time is serial
        ),
        cost_estimate=pl.CostEstimate(
            flops=2 * B * T * (H + Z) * G,
            transcendentals=B * T * 5 * Z,
            bytes_accessed=(emb_flat.size * emb_flat.dtype.itemsize
                            + wih_p.size * wih_p.dtype.itemsize
                            + whh_p.size * whh_p.dtype.itemsize
                            + bias_p.size * 4 + B * Z * 4),
        ),
    )(emb_flat, wih_p, whh_p, bias_p)
    return out


def reference_forward(x, embedding, w_ih, w_hh, b_ih, b_hh):
    """Pure-JAX reference matching torch.nn.LSTM semantics (f32 throughout)."""
    B, T = x.shape
    Z = w_hh.shape[1]
    emb = jnp.take(embedding, x, axis=0)                               # (B, T, H)

    def step(carry, x_t):
        h, c = carry
        gates = x_t @ w_ih.T + h @ w_hh.T + b_ih + b_hh
        i = jax.nn.sigmoid(gates[:, 0 * Z:1 * Z])
        f = jax.nn.sigmoid(gates[:, 1 * Z:2 * Z])
        g = jnp.tanh(gates[:, 2 * Z:3 * Z])
        o = jax.nn.sigmoid(gates[:, 3 * Z:4 * Z])
        c = f * c + i * g
        h = o * jnp.tanh(c)
        return (h, c), None

    h0 = jnp.zeros((B, Z), jnp.float32)
    c0 = jnp.zeros((B, Z), jnp.float32)
    (h_last, _), _ = lax.scan(step, (h0, c0), jnp.transpose(emb, (1, 0, 2)))
    return h_last


if __name__ == "__main__":
    # module hyper-params (small, consistent with the forward)
    z_dim, hidden_dim, vocab_size = 32, 32, 16
    B, T = 2, 8

    key = jax.random.PRNGKey(0)
    k_emb, k_wih, k_whh, k_bih, k_bhh, k_x = jax.random.split(key, 6)

    bound = 1.0 / (z_dim ** 0.5)
    embedding = jax.random.normal(k_emb, (vocab_size, hidden_dim), jnp.float32)
    w_ih = jax.random.uniform(k_wih, (4 * z_dim, hidden_dim), jnp.float32, -bound, bound)
    w_hh = jax.random.uniform(k_whh, (4 * z_dim, z_dim), jnp.float32, -bound, bound)
    b_ih = jax.random.uniform(k_bih, (4 * z_dim,), jnp.float32, -bound, bound)
    b_hh = jax.random.uniform(k_bhh, (4 * z_dim,), jnp.float32, -bound, bound)

    x = jax.random.randint(k_x, (B, T), 0, vocab_size, dtype=jnp.int32)

    forward = jax.jit(lstm_embed_forward, static_argnames=("compute_dtype",))
    ref = jax.block_until_ready(
        reference_forward(x, embedding, w_ih, w_hh, b_ih, b_hh))

    # 1) Exactness check of the kernel logic (f32 streaming).
    out_f32 = jax.block_until_ready(
        forward(x, embedding, w_ih, w_hh, b_ih, b_hh, compute_dtype=jnp.float32))
    assert out_f32.shape == (B, z_dim)
    assert jnp.allclose(out_f32, ref, atol=1e-4, rtol=1e-4), "f32 kernel mismatch"

    # 2) Default fast path: bf16-streamed operands/weights, f32 accumulation
    #    and f32 h/c state (looser tolerance reflects bf16 operand rounding).
    out_bf16 = jax.block_until_ready(forward(x, embedding, w_ih, w_hh, b_ih, b_hh))
    assert out_bf16.shape == (B, z_dim)
    assert jnp.allclose(out_bf16, ref, atol=3e-2, rtol=3e-2), "bf16 kernel mismatch"

    print("KERNEL_OK")
</pallas_src>

<mosaic_0001>
module attributes {stable_mosaic.version = 11 : i64} {
  func.func @_lstm_chunk_kernel(%arg0: i32, %arg1: memref<16x32xf32, #tpu.memory_space<vmem>>, %arg2: memref<32x128xf32, #tpu.memory_space<vmem>>, %arg3: memref<32x128xf32, #tpu.memory_space<vmem>>, %arg4: memref<1x128xf32, #tpu.memory_space<vmem>>, %arg5: memref<2x32xf32, #tpu.memory_space<vmem>>, %arg6: memref<2x32xf32, #tpu.memory_space<vmem>>, %arg7: memref<2x32xf32, #tpu.memory_space<vmem>>, %arg8: memref<16x128xf32, #tpu.memory_space<vmem>>) attributes {dimension_semantics = [#tpu.dimension_semantics<arbitrary>], iteration_bounds = array<i64: 1>, scalar_prefetch = 0 : i64, scratch_operands = 3 : i64, tpu.core_type = #tpu.core_type<tc>, window_params = [{transform_indices = @transform_0, window_bounds = array<i64: 16, 32>}, {pipeline_mode = #tpu.pipeline_mode<synchronous>, transform_indices = @transform_1, window_bounds = array<i64: 32, 128>}, {pipeline_mode = #tpu.pipeline_mode<synchronous>, transform_indices = @transform_2, window_bounds = array<i64: 32, 128>}, {pipeline_mode = #tpu.pipeline_mode<synchronous>, transform_indices = @transform_3, window_bounds = array<i64: 1, 128>}, {pipeline_mode = #tpu.pipeline_mode<synchronous>, transform_indices = @transform_4, window_bounds = array<i64: 2, 32>}]} {
    %c0_i32 = arith.constant 0 : i32
    %0 = arith.cmpi eq, %arg0, %c0_i32 : i32
    %1 = arith.extui %0 : i1 to i32
    %c0_i32_0 = arith.constant 0 : i32
    %2 = arith.cmpi ne, %1, %c0_i32_0 : i32
    scf.if %2 {
      %cst_83 = arith.constant 0.000000e+00 : f32
      %215 = vector.broadcast %cst_83 : f32 to vector<2x32xf32>
      %c0_84 = arith.constant 0 : index
      %c0_85 = arith.constant 0 : index
      %216 = vector.load %arg6[%c0_84, %c0_85] : memref<2x32xf32, #tpu.memory_space<vmem>>, vector<2x32xf32>
      tpu.vector_store %arg6[%c0_84, %c0_85], %215 {strides = array<i32>} : memref<2x32xf32, #tpu.memory_space<vmem>>, vector<2x32xf32>,
      %cst_86 = arith.constant 0.000000e+00 : f32
      %217 = vector.broadcast %cst_86 : f32 to vector<2x32xf32>
      %c0_87 = arith.constant 0 : index
      %c0_88 = arith.constant 0 : index
      %218 = vector.load %arg7[%c0_87, %c0_88] : memref<2x32xf32, #tpu.memory_space<vmem>>, vector<2x32xf32>
      tpu.vector_store %arg7[%c0_87, %c0_88], %217 {strides = array<i32>} : memref<2x32xf32, #tpu.memory_space<vmem>>, vector<2x32xf32>,
    } else {
    }
    %c0 = arith.constant 0 : index
    %c0_1 = arith.constant 0 : index
    %3 = vector.load %arg1[%c0, %c0_1] : memref<16x32xf32, #tpu.memory_space<vmem>>, vector<16x32xf32>
    %c0_2 = arith.constant 0 : index
    %c0_3 = arith.constant 0 : index
    %4 = vector.load %arg2[%c0_2, %c0_3] : memref<32x128xf32, #tpu.memory_space<vmem>>, vector<32x128xf32>
    %cst = arith.constant dense<0.000000e+00> : vector<16x128xf32>
    %5 = tpu.matmul %3, %4, %cst {dimension_numbers = #tpu.dot_dimension_numbers<[1], [0], [0], [1], [0, 0, 1, 1], [], []>} : vector<16x32xf32>, vector<32x128xf32>, vector<16x128xf32> -> vector<16x128xf32>
    %c0_4 = arith.constant 0 : index
    %c0_5 = arith.constant 0 : index
    %6 = vector.load %arg4[%c0_4, %c0_5] : memref<1x128xf32, #tpu.memory_space<vmem>>, vector<1x128xf32>
    %7 = vector.broadcast %6 : vector<1x128xf32> to vector<16x128xf32>
    %8 = arith.addf %5, %7 : vector<16x128xf32>
    %c0_6 = arith.constant 0 : index
    %c0_7 = arith.constant 0 : index
    %9 = vector.load %arg8[%c0_6, %c0_7] : memref<16x128xf32, #tpu.memory_space<vmem>>, vector<16x128xf32>
    tpu.vector_store %arg8[%c0_6, %c0_7], %8 {strides = array<i32>} : memref<16x128xf32, #tpu.memory_space<vmem>>, vector<16x128xf32>,
    %10 = tpu.iota {dimensions = array<i32: 1>} : vector<2x128xi32>
    %c64_i32 = arith.constant 64 : i32
    %11 = vector.broadcast %c64_i32 : i32 to vector<2x128xi32>
    %12 = arith.cmpi sge, %10, %11 : vector<2x128xi32>
    %c96_i32 = arith.constant 96 : i32
    %13 = vector.broadcast %c96_i32 : i32 to vector<2x128xi32>
    %14 = arith.cmpi slt, %10, %13 : vector<2x128xi32>
    %15 = arith.andi %12, %14 : vector<2x128xi1>
    %c0_8 = arith.constant 0 : index
    %c0_9 = arith.constant 0 : index
    %16 = vector.load %arg6[%c0_8, %c0_9] : memref<2x32xf32, #tpu.memory_space<vmem>>, vector<2x32xf32>
    %c0_10 = arith.constant 0 : index
    %c0_11 = arith.constant 0 : index
    %17 = vector.load %arg7[%c0_10, %c0_11] : memref<2x32xf32, #tpu.memory_space<vmem>>, vector<2x32xf32>
    %c0_i32_12 = arith.constant 0 : i32
    %c2_i32 = arith.constant 2 : i32
    %18 = arith.muli %c0_i32_12, %c2_i32 : i32
    %19 = arith.index_cast %18 : i32 to index
    %c0_13 = arith.constant 0 : index
    %20 = vector.load %arg8[%19, %c0_13] : memref<16x128xf32, #tpu.memory_space<vmem>>, vector<2x128xf32>
    %c0_14 = arith.constant 0 : index
    %c0_15 = arith.constant 0 : index
    %21 = vector.load %arg3[%c0_14, %c0_15] : memref<32x128xf32, #tpu.memory_space<vmem>>, vector<32x128xf32>
    %cst_16 = arith.constant dense<0.000000e+00> : vector<2x128xf32>
    %22 = tpu.matmul %16, %21, %cst_16 {dimension_numbers = #tpu.dot_dimension_numbers<[1], [0], [0], [1], [0, 0, 1, 1], [], []>} : vector<2x32xf32>, vector<32x128xf32>, vector<2x128xf32> -> vector<2x128xf32>
    %23 = arith.addf %20, %22 : vector<2x128xf32>
    %cst_17 = arith.constant 5.000000e-01 : f32
    %24 = vector.broadcast %cst_17 : f32 to vector<2x128xf32>
    %25 = arith.mulf %24, %23 : vector<2x128xf32>
    %26 = arith.select %15, %23, %25 : vector<2x128xi1>, vector<2x128xf32>
    %27 = math.tanh %26 : vector<2x128xf32>
    %cst_18 = arith.constant 1.000000e+00 : f32
    %28 = vector.broadcast %cst_18 : f32 to vector<2x128xf32>
    %29 = arith.addf %27, %28 : vector<2x128xf32>
    %cst_19 = arith.constant 5.000000e-01 : f32
    %30 = vector.broadcast %cst_19 : f32 to vector<2x128xf32>
    %31 = arith.mulf %30, %29 : vector<2x128xf32>
    %32 = arith.select %15, %27, %31 : vector<2x128xi1>, vector<2x128xf32>
    %33 = vector.extract_strided_slice %32 {offsets = [0, 0], sizes = [2, 32], strides = [1, 1]} : vector<2x128xf32> to vector<2x32xf32>
    %34 = vector.extract_strided_slice %32 {offsets = [0, 32], sizes = [2, 32], strides = [1, 1]} : vector<2x128xf32> to vector<2x32xf32>
    %35 = vector.extract_strided_slice %32 {offsets = [0, 64], sizes = [2, 32], strides = [1, 1]} : vector<2x128xf32> to vector<2x32xf32>
    %36 = vector.extract_strided_slice %32 {offsets = [0, 96], sizes = [2, 32], strides = [1, 1]} : vector<2x128xf32> to vector<2x32xf32>
    %37 = arith.mulf %34, %17 : vector<2x32xf32>
    %38 = arith.mulf %33, %35 : vector<2x32xf32>
    %39 = arith.addf %37, %38 : vector<2x32xf32>
    %40 = math.tanh %39 : vector<2x32xf32>
    %41 = arith.mulf %36, %40 : vector<2x32xf32>
    %c1_i32 = arith.constant 1 : i32
    %c2_i32_20 = arith.constant 2 : i32
    %42 = arith.muli %c1_i32, %c2_i32_20 : i32
    %43 = arith.index_cast %42 : i32 to index
    %c0_21 = arith.constant 0 : index
    %44 = vector.load %arg8[%43, %c0_21] : memref<16x128xf32, #tpu.memory_space<vmem>>, vector<2x128xf32>
    %c0_22 = arith.constant 0 : index
    %c0_23 = arith.constant 0 : index
    %45 = vector.load %arg3[%c0_22, %c0_23] : memref<32x128xf32, #tpu.memory_space<vmem>>, vector<32x128xf32>
    %cst_24 = arith.constant dense<0.000000e+00> : vector<2x128xf32>
    %46 = tpu.matmul %41, %45, %cst_24 {dimension_numbers = #tpu.dot_dimension_numbers<[1], [0], [0], [1], [0, 0, 1, 1], [], []>} : vector<2x32xf32>, vector<32x128xf32>, vector<2x128xf32> -> vector<2x128xf32>
    %47 = arith.addf %44, %46 : vector<2x128xf32>
    %cst_25 = arith.constant 5.000000e-01 : f32
    %48 = vector.broadcast %cst_25 : f32 to vector<2x128xf32>
    %49 = arith.mulf %48, %47 : vector<2x128xf32>
    %50 = arith.select %15, %47, %49 : vector<2x128xi1>, vector<2x128xf32>
    %51 = math.tanh %50 : vector<2x128xf32>
    %cst_26 = arith.constant 1.000000e+00 : f32
    %52 = vector.broadcast %cst_26 : f32 to vector<2x128xf32>
    %53 = arith.addf %51, %52 : vector<2x128xf32>
    %cst_27 = arith.constant 5.000000e-01 : f32
    %54 = vector.broadcast %cst_27 : f32 to vector<2x128xf32>
    %55 = arith.mulf %54, %53 : vector<2x128xf32>
    %56 = arith.select %15, %51, %55 : vector<2x128xi1>, vector<2x128xf32>
    %57 = vector.extract_strided_slice %56 {offsets = [0, 0], sizes = [2, 32], strides = [1, 1]} : vector<2x128xf32> to vector<2x32xf32>
    %58 = vector.extract_strided_slice %56 {offsets = [0, 32], sizes = [2, 32], strides = [1, 1]} : vector<2x128xf32> to vector<2x32xf32>
    %59 = vector.extract_strided_slice %56 {offsets = [0, 64], sizes = [2, 32], strides = [1, 1]} : vector<2x128xf32> to vector<2x32xf32>
    %60 = vector.extract_strided_slice %56 {offsets = [0, 96], sizes = [2, 32], strides = [1, 1]} : vector<2x128xf32> to vector<2x32xf32>
    %61 = arith.mulf %58, %39 : vector<2x32xf32>
    %62 = arith.mulf %57, %59 : vector<2x32xf32>
    %63 = arith.addf %61, %62 : vector<2x32xf32>
    %64 = math.tanh %63 : vector<2x32xf32>
    %65 = arith.mulf %60, %64 : vector<2x32xf32>
    %c2_i32_28 = arith.constant 2 : i32
    %c2_i32_29 = arith.constant 2 : i32
    %66 = arith.muli %c2_i32_28, %c2_i32_29 : i32
    %67 = arith.index_cast %66 : i32 to index
    %c0_30 = arith.constant 0 : index
    %68 = vector.load %arg8[%67, %c0_30] : memref<16x128xf32, #tpu.memory_space<vmem>>, vector<2x128xf32>
    %c0_31 = arith.constant 0 : index
    %c0_32 = arith.constant 0 : index
    %69 = vector.load %arg3[%c0_31, %c0_32] : memref<32x128xf32, #tpu.memory_space<vmem>>, vector<32x128xf32>
    %cst_33 = arith.constant dense<0.000000e+00> : vector<2x128xf32>
    %70 = tpu.matmul %65, %69, %cst_33 {dimension_numbers = #tpu.dot_dimension_numbers<[1], [0], [0], [1], [0, 0, 1, 1], [], []>} : vector<2x32xf32>, vector<32x128xf32>, vector<2x128xf32> -> vector<2x128xf32>
    %71 = arith.addf %68, %70 : vector<2x128xf32>
    %cst_34 = arith.constant 5.000000e-01 : f32
    %72 = vector.broadcast %cst_34 : f32 to vector<2x128xf32>
    %73 = arith.mulf %72, %71 : vector<2x128xf32>
    %74 = arith.select %15, %71, %73 : vector<2x128xi1>, vector<2x128xf32>
    %75 = math.tanh %74 : vector<2x128xf32>
    %cst_35 = arith.constant 1.000000e+00 : f32
    %76 = vector.broadcast %cst_35 : f32 to vector<2x128xf32>
    %77 = arith.addf %75, %76 : vector<2x128xf32>
    %cst_36 = arith.constant 5.000000e-01 : f32
    %78 = vector.broadcast %cst_36 : f32 to vector<2x128xf32>
    %79 = arith.mulf %78, %77 : vector<2x128xf32>
    %80 = arith.select %15, %75, %79 : vector<2x128xi1>, vector<2x128xf32>
    %81 = vector.extract_strided_slice %80 {offsets = [0, 0], sizes = [2, 32], strides = [1, 1]} : vector<2x128xf32> to vector<2x32xf32>
    %82 = vector.extract_strided_slice %80 {offsets = [0, 32], sizes = [2, 32], strides = [1, 1]} : vector<2x128xf32> to vector<2x32xf32>
    %83 = vector.extract_strided_slice %80 {offsets = [0, 64], sizes = [2, 32], strides = [1, 1]} : vector<2x128xf32> to vector<2x32xf32>
    %84 = vector.extract_strided_slice %80 {offsets = [0, 96], sizes = [2, 32], strides = [1, 1]} : vector<2x128xf32> to vector<2x32xf32>
    %85 = arith.mulf %82, %63 : vector<2x32xf32>
    %86 = arith.mulf %81, %83 : vector<2x32xf32>
    %87 = arith.addf %85, %86 : vector<2x32xf32>
    %88 = math.tanh %87 : vector<2x32xf32>
    %89 = arith.mulf %84, %88 : vector<2x32xf32>
    %c3_i32 = arith.constant 3 : i32
    %c2_i32_37 = arith.constant 2 : i32
    %90 = arith.muli %c3_i32, %c2_i32_37 : i32
    %91 = arith.index_cast %90 : i32 to index
    %c0_38 = arith.constant 0 : index
    %92 = vector.load %arg8[%91, %c0_38] : memref<16x128xf32, #tpu.memory_space<vmem>>, vector<2x128xf32>
    %c0_39 = arith.constant 0 : index
    %c0_40 = arith.constant 0 : index
    %93 = vector.load %arg3[%c0_39, %c0_40] : memref<32x128xf32, #tpu.memory_space<vmem>>, vector<32x128xf32>
    %cst_41 = arith.constant dense<0.000000e+00> : vector<2x128xf32>
    %94 = tpu.matmul %89, %93, %cst_41 {dimension_numbers = #tpu.dot_dimension_numbers<[1], [0], [0], [1], [0, 0, 1, 1], [], []>} : vector<2x32xf32>, vector<32x128xf32>, vector<2x128xf32> -> vector<2x128xf32>
    %95 = arith.addf %92, %94 : vector<2x128xf32>
    %cst_42 = arith.constant 5.000000e-01 : f32
    %96 = vector.broadcast %cst_42 : f32 to vector<2x128xf32>
    %97 = arith.mulf %96, %95 : vector<2x128xf32>
    %98 = arith.select %15, %95, %97 : vector<2x128xi1>, vector<2x128xf32>
    %99 = math.tanh %98 : vector<2x128xf32>
    %cst_43 = arith.constant 1.000000e+00 : f32
    %100 = vector.broadcast %cst_43 : f32 to vector<2x128xf32>
    %101 = arith.addf %99, %100 : vector<2x128xf32>
    %cst_44 = arith.constant 5.000000e-01 : f32
    %102 = vector.broadcast %cst_44 : f32 to vector<2x128xf32>
    %103 = arith.mulf %102, %101 : vector<2x128xf32>
    %104 = arith.select %15, %99, %103 : vector<2x128xi1>, vector<2x128xf32>
    %105 = vector.extract_strided_slice %104 {offsets = [0, 0], sizes = [2, 32], strides = [1, 1]} : vector<2x128xf32> to vector<2x32xf32>
    %106 = vector.extract_strided_slice %104 {offsets = [0, 32], sizes = [2, 32], strides = [1, 1]} : vector<2x128xf32> to vector<2x32xf32>
    %107 = vector.extract_strided_slice %104 {offsets = [0, 64], sizes = [2, 32], strides = [1, 1]} : vector<2x128xf32> to vector<2x32xf32>
    %108 = vector.extract_strided_slice %104 {offsets = [0, 96], sizes = [2, 32], strides = [1, 1]} : vector<2x128xf32> to vector<2x32xf32>
    %109 = arith.mulf %106, %87 : vector<2x32xf32>
    %110 = arith.mulf %105, %107 : vector<2x32xf32>
    %111 = arith.addf %109, %110 : vector<2x32xf32>
    %112 = math.tanh %111 : vector<2x32xf32>
    %113 = arith.mulf %108, %112 : vector<2x32xf32>
    %c4_i32 = arith.constant 4 : i32
    %c2_i32_45 = arith.constant 2 : i32
    %114 = arith.muli %c4_i32, %c2_i32_45 : i32
    %115 = arith.index_cast %114 : i32 to index
    %c0_46 = arith.constant 0 : index
    %116 = vector.load %arg8[%115, %c0_46] : memref<16x128xf32, #tpu.memory_space<vmem>>, vector<2x128xf32>
    %c0_47 = arith.constant 0 : index
    %c0_48 = arith.constant 0 : index
    %117 = vector.load %arg3[%c0_47, %c0_48] : memref<32x128xf32, #tpu.memory_space<vmem>>, vector<32x128xf32>
    %cst_49 = arith.constant dense<0.000000e+00> : vector<2x128xf32>
    %118 = tpu.matmul %113, %117, %cst_49 {dimension_numbers = #tpu.dot_dimension_numbers<[1], [0], [0], [1], [0, 0, 1, 1], [], []>} : vector<2x32xf32>, vector<32x128xf32>, vector<2x128xf32> -> vector<2x128xf32>
    %119 = arith.addf %116, %118 : vector<2x128xf32>
    %cst_50 = arith.constant 5.000000e-01 : f32
    %120 = vector.broadcast %cst_50 : f32 to vector<2x128xf32>
    %121 = arith.mulf %120, %119 : vector<2x128xf32>
    %122 = arith.select %15, %119, %121 : vector<2x128xi1>, vector<2x128xf32>
    %123 = math.tanh %122 : vector<2x128xf32>
    %cst_51 = arith.constant 1.000000e+00 : f32
    %124 = vector.broadcast %cst_51 : f32 to vector<2x128xf32>
    %125 = arith.addf %123, %124 : vector<2x128xf32>
    %cst_52 = arith.constant 5.000000e-01 : f32
    %126 = vector.broadcast %cst_52 : f32 to vector<2x128xf32>
    %127 = arith.mulf %126, %125 : vector<2x128xf32>
    %128 = arith.select %15, %123, %127 : vector<2x128xi1>, vector<2x128xf32>
    %129 = vector.extract_strided_slice %128 {offsets = [0, 0], sizes = [2, 32], strides = [1, 1]} : vector<2x128xf32> to vector<2x32xf32>
    %130 = vector.extract_strided_slice %128 {offsets = [0, 32], sizes = [2, 32], strides = [1, 1]} : vector<2x128xf32> to vector<2x32xf32>
    %131 = vector.extract_strided_slice %128 {offsets = [0, 64], sizes = [2, 32], strides = [1, 1]} : vector<2x128xf32> to vector<2x32xf32>
    %132 = vector.extract_strided_slice %128 {offsets = [0, 96], sizes = [2, 32], strides = [1, 1]} : vector<2x128xf32> to vector<2x32xf32>
    %133 = arith.mulf %130, %111 : vector<2x32xf32>
    %134 = arith.mulf %129, %131 : vector<2x32xf32>
    %135 = arith.addf %133, %134 : vector<2x32xf32>
    %136 = math.tanh %135 : vector<2x32xf32>
    %137 = arith.mulf %132, %136 : vector<2x32xf32>
    %c5_i32 = arith.constant 5 : i32
    %c2_i32_53 = arith.constant 2 : i32
    %138 = arith.muli %c5_i32, %c2_i32_53 : i32
    %139 = arith.index_cast %138 : i32 to index
    %c0_54 = arith.constant 0 : index
    %140 = vector.load %arg8[%139, %c0_54] : memref<16x128xf32, #tpu.memory_space<vmem>>, vector<2x128xf32>
    %c0_55 = arith.constant 0 : index
    %c0_56 = arith.constant 0 : index
    %141 = vector.load %arg3[%c0_55, %c0_56] : memref<32x128xf32, #tpu.memory_space<vmem>>, vector<32x128xf32>
    %cst_57 = arith.constant dense<0.000000e+00> : vector<2x128xf32>
    %142 = tpu.matmul %137, %141, %cst_57 {dimension_numbers = #tpu.dot_dimension_numbers<[1], [0], [0], [1], [0, 0, 1, 1], [], []>} : vector<2x32xf32>, vector<32x128xf32>, vector<2x128xf32> -> vector<2x128xf32>
    %143 = arith.addf %140, %142 : vector<2x128xf32>
    %cst_58 = arith.constant 5.000000e-01 : f32
    %144 = vector.broadcast %cst_58 : f32 to vector<2x128xf32>
    %145 = arith.mulf %144, %143 : vector<2x128xf32>
    %146 = arith.select %15, %143, %145 : vector<2x128xi1>, vector<2x128xf32>
    %147 = math.tanh %146 : vector<2x128xf32>
    %cst_59 = arith.constant 1.000000e+00 : f32
    %148 = vector.broadcast %cst_59 : f32 to vector<2x128xf32>
    %149 = arith.addf %147, %148 : vector<2x128xf32>
    %cst_60 = arith.constant 5.000000e-01 : f32
    %150 = vector.broadcast %cst_60 : f32 to vector<2x128xf32>
    %151 = arith.mulf %150, %149 : vector<2x128xf32>
    %152 = arith.select %15, %147, %151 : vector<2x128xi1>, vector<2x128xf32>
    %153 = vector.extract_strided_slice %152 {offsets = [0, 0], sizes = [2, 32], strides = [1, 1]} : vector<2x128xf32> to vector<2x32xf32>
    %154 = vector.extract_strided_slice %152 {offsets = [0, 32], sizes = [2, 32], strides = [1, 1]} : vector<2x128xf32> to vector<2x32xf32>
    %155 = vector.extract_strided_slice %152 {offsets = [0, 64], sizes = [2, 32], strides = [1, 1]} : vector<2x128xf32> to vector<2x32xf32>
    %156 = vector.extract_strided_slice %152 {offsets = [0, 96], sizes = [2, 32], strides = [1, 1]} : vector<2x128xf32> to vector<2x32xf32>
    %157 = arith.mulf %154, %135 : vector<2x32xf32>
    %158 = arith.mulf %153, %155 : vector<2x32xf32>
    %159 = arith.addf %157, %158 : vector<2x32xf32>
    %160 = math.tanh %159 : vector<2x32xf32>
    %161 = arith.mulf %156, %160 : vector<2x32xf32>
    %c6_i32 = arith.constant 6 : i32
    %c2_i32_61 = arith.constant 2 : i32
    %162 = arith.muli %c6_i32, %c2_i32_61 : i32
    %163 = arith.index_cast %162 : i32 to index
    %c0_62 = arith.constant 0 : index
    %164 = vector.load %arg8[%163, %c0_62] : memref<16x128xf32, #tpu.memory_space<vmem>>, vector<2x128xf32>
    %c0_63 = arith.constant 0 : index
    %c0_64 = arith.constant 0 : index
    %165 = vector.load %arg3[%c0_63, %c0_64] : memref<32x128xf32, #tpu.memory_space<vmem>>, vector<32x128xf32>
    %cst_65 = arith.constant dense<0.000000e+00> : vector<2x128xf32>
    %166 = tpu.matmul %161, %165, %cst_65 {dimension_numbers = #tpu.dot_dimension_numbers<[1], [0], [0], [1], [0, 0, 1, 1], [], []>} : vector<2x32xf32>, vector<32x128xf32>, vector<2x128xf32> -> vector<2x128xf32>
    %167 = arith.addf %164, %166 : vector<2x128xf32>
    %cst_66 = arith.constant 5.000000e-01 : f32
    %168 = vector.broadcast %cst_66 : f32 to vector<2x128xf32>
    %169 = arith.mulf %168, %167 : vector<2x128xf32>
    %170 = arith.select %15, %167, %169 : vector<2x128xi1>, vector<2x128xf32>
    %171 = math.tanh %170 : vector<2x128xf32>
    %cst_67 = arith.constant 1.000000e+00 : f32
    %172 = vector.broadcast %cst_67 : f32 to vector<2x128xf32>
    %173 = arith.addf %171, %172 : vector<2x128xf32>
    %cst_68 = arith.constant 5.000000e-01 : f32
    %174 = vector.broadcast %cst_68 : f32 to vector<2x128xf32>
    %175 = arith.mulf %174, %173 : vector<2x128xf32>
    %176 = arith.select %15, %171, %175 : vector<2x128xi1>, vector<2x128xf32>
    %177 = vector.extract_strided_slice %176 {offsets = [0, 0], sizes = [2, 32], strides = [1, 1]} : vector<2x128xf32> to vector<2x32xf32>
    %178 = vector.extract_strided_slice %176 {offsets = [0, 32], sizes = [2, 32], strides = [1, 1]} : vector<2x128xf32> to vector<2x32xf32>
    %179 = vector.extract_strided_slice %176 {offsets = [0, 64], sizes = [2, 32], strides = [1, 1]} : vector<2x128xf32> to vector<2x32xf32>
    %180 = vector.extract_strided_slice %176 {offsets = [0, 96], sizes = [2, 32], strides = [1, 1]} : vector<2x128xf32> to vector<2x32xf32>
    %181 = arith.mulf %178, %159 : vector<2x32xf32>
    %182 = arith.mulf %177, %179 : vector<2x32xf32>
    %183 = arith.addf %181, %182 : vector<2x32xf32>
    %184 = math.tanh %183 : vector<2x32xf32>
    %185 = arith.mulf %180, %184 : vector<2x32xf32>
    %c7_i32 = arith.constant 7 : i32
    %c2_i32_69 = arith.constant 2 : i32
    %186 = arith.muli %c7_i32, %c2_i32_69 : i32
    %187 = arith.index_cast %186 : i32 to index
    %c0_70 = arith.constant 0 : index
    %188 = vector.load %arg8[%187, %c0_70] : memref<16x128xf32, #tpu.memory_space<vmem>>, vector<2x128xf32>
    %c0_71 = arith.constant 0 : index
    %c0_72 = arith.constant 0 : index
    %189 = vector.load %arg3[%c0_71, %c0_72] : memref<32x128xf32, #tpu.memory_space<vmem>>, vector<32x128xf32>
    %cst_73 = arith.constant dense<0.000000e+00> : vector<2x128xf32>
    %190 = tpu.matmul %185, %189, %cst_73 {dimension_numbers = #tpu.dot_dimension_numbers<[1], [0], [0], [1], [0, 0, 1, 1], [], []>} : vector<2x32xf32>, vector<32x128xf32>, vector<2x128xf32> -> vector<2x128xf32>
    %191 = arith.addf %188, %190 : vector<2x128xf32>
    %cst_74 = arith.constant 5.000000e-01 : f32
    %192 = vector.broadcast %cst_74 : f32 to vector<2x128xf32>
    %193 = arith.mulf %192, %191 : vector<2x128xf32>
    %194 = arith.select %15, %191, %193 : vector<2x128xi1>, vector<2x128xf32>
    %195 = math.tanh %194 : vector<2x128xf32>
    %cst_75 = arith.constant 1.000000e+00 : f32
    %196 = vector.broadcast %cst_75 : f32 to vector<2x128xf32>
    %197 = arith.addf %195, %196 : vector<2x128xf32>
    %cst_76 = arith.constant 5.000000e-01 : f32
    %198 = vector.broadcast %cst_76 : f32 to vector<2x128xf32>
    %199 = arith.mulf %198, %197 : vector<2x128xf32>
    %200 = arith.select %15, %195, %199 : vector<2x128xi1>, vector<2x128xf32>
    %201 = vector.extract_strided_slice %200 {offsets = [0, 0], sizes = [2, 32], strides = [1, 1]} : vector<2x128xf32> to vector<2x32xf32>
    %202 = vector.extract_strided_slice %200 {offsets = [0, 32], sizes = [2, 32], strides = [1, 1]} : vector<2x128xf32> to vector<2x32xf32>
    %203 = vector.extract_strided_slice %200 {offsets = [0, 64], sizes = [2, 32], strides = [1, 1]} : vector<2x128xf32> to vector<2x32xf32>
    %204 = vector.extract_strided_slice %200 {offsets = [0, 96], sizes = [2, 32], strides = [1, 1]} : vector<2x128xf32> to vector<2x32xf32>
    %205 = arith.mulf %202, %183 : vector<2x32xf32>
    %206 = arith.mulf %201, %203 : vector<2x32xf32>
    %207 = arith.addf %205, %206 : vector<2x32xf32>
    %208 = math.tanh %207 : vector<2x32xf32>
    %209 = arith.mulf %204, %208 : vector<2x32xf32>
    %c8_i32 = arith.constant 8 : i32
    %c0_77 = arith.constant 0 : index
    %c0_78 = arith.constant 0 : index
    %210 = vector.load %arg6[%c0_77, %c0_78] : memref<2x32xf32, #tpu.memory_space<vmem>>, vector<2x32xf32>
    tpu.vector_store %arg6[%c0_77, %c0_78], %209 {strides = array<i32>} : memref<2x32xf32, #tpu.memory_space<vmem>>, vector<2x32xf32>,
    %c0_79 = arith.constant 0 : index
    %c0_80 = arith.constant 0 : index
    %211 = vector.load %arg7[%c0_79, %c0_80] : memref<2x32xf32, #tpu.memory_space<vmem>>, vector<2x32xf32>
    tpu.vector_store %arg7[%c0_79, %c0_80], %207 {strides = array<i32>} : memref<2x32xf32, #tpu.memory_space<vmem>>, vector<2x32xf32>,
    %c0_i32_81 = arith.constant 0 : i32
    %212 = arith.cmpi eq, %arg0, %c0_i32_81 : i32
    %213 = arith.extui %212 : i1 to i32
    %c0_i32_82 = arith.constant 0 : i32
    %214 = arith.cmpi ne, %213, %c0_i32_82 : i32
    scf.if %214 {
      %c0_83 = arith.constant 0 : index
      %c0_84 = arith.constant 0 : index
      %215 = vector.load %arg5[%c0_83, %c0_84] : memref<2x32xf32, #tpu.memory_space<vmem>>, vector<2x32xf32>
      tpu.vector_store %arg5[%c0_83, %c0_84], %209 {strides = array<i32>} : memref<2x32xf32, #tpu.memory_space<vmem>>, vector<2x32xf32>,
    } else {
    }
    return
  }
  func.func @transform_0(%arg0: i32) -> (i32, i32) {
    %c0_i32 = arith.constant 0 : i32
    %c0_i32_0 = arith.constant 0 : i32
    return %arg0, %c0_i32 : i32, i32
  }
  func.func @transform_1(%arg0: i32) -> (i32, i32) {
    %c0_i32 = arith.constant 0 : i32
    %c0_i32_0 = arith.constant 0 : i32
    %c0_i32_1 = arith.constant 0 : i32
    return %c0_i32, %c0_i32_0 : i32, i32
  }
  func.func @transform_2(%arg0: i32) -> (i32, i32) {
    %c0_i32 = arith.constant 0 : i32
    %c0_i32_0 = arith.constant 0 : i32
    %c0_i32_1 = arith.constant 0 : i32
    return %c0_i32, %c0_i32_0 : i32, i32
  }
  func.func @transform_3(%arg0: i32) -> (i32, i32) {
    %c0_i32 = arith.constant 0 : i32
    %c0_i32_0 = arith.constant 0 : i32
    %c0_i32_1 = arith.constant 0 : i32
    return %c0_i32, %c0_i32_0 : i32, i32
  }
  func.func @transform_4(%arg0: i32) -> (i32, i32) {
    %c0_i32 = arith.constant 0 : i32
    %c0_i32_0 = arith.constant 0 : i32
    %c0_i32_1 = arith.constant 0 : i32
    return %c0_i32, %c0_i32_0 : i32, i32
  }
}

</mosaic_0001>

<bundles_post_ra>
// kernel: lstm_embed_forward.1
= control target key start
LH: loop header
LB: loop body
LE: loop exit
PB: predicated region body
PF: predicated region fallthrough
CT: control target
= control target key end

     0   :  { %vm38_vm0 = vcmask 261120   ;;  %v1239_v6 = vmov 0.0|0.0   ;;  %vm22_vm1 = vcmask 254976   ;;  %vm1240_vm2 = vmmov 0   ;;  %s1454_s0 = inlined_call_operand.vmem [shape: f32[16,32], index: 0, kind: input, shape index: {}]   ;;  %s1455_s1 = inlined_call_operand.vmem [shape: f32[32,128], index: 1, kind: input, shape index: {}]   ;;  %s1456_s2 = inlined_call_operand.vmem [shape: f32[32,128], index: 2, kind: input, shape index: {}]   ;;  %s1457_s3 = inlined_call_operand.vmem [shape: f32[1,128], index: 3, kind: input, shape index: {}]   ;;  %s1458_s4 = inlined_call_operand.hbm [shape: f32[2,32], index: 4, kind: output, shape index: {}]  }
   0x1   :  { %v27_v0 = vld [vmem:[%s1455_s1] sm:$0xff]  ;;  %v28_v1 = vld [vmem:[%s1455_s1 + $0x8] sm:$0xff]  ;;  %v29_v2 = vld [vmem:[%s1455_s1 + $0x10] sm:$0xff]  ;;  %1128 = vmatprep.subr.bf16.mxu1 %v1239_v6  ;;  %v1241_v11 = vmov 0.0  }
   0x2   :  { %v1120_v3 = vpack.c.bf16 %v28_v1, %v27_v0  ;;  %v30_v4 = vld [vmem:[%s1455_s1 + $0x18] sm:$0xff]  ;;  %v25_v5 = vld [vmem:[%s1454_s0] sm:$0xff]  ;;  %v131_v9 = vld [vmem:[%s1456_s2 + $0x8] sm:$0xff]  ;;  %1040 = vmatprep.mubr.msk.f32.mxu1 %vm1240_vm2, %v1241_v11  ;;  %23 = vst.msk [vmem:[#allocation2] sm:$0x3] %vm22_vm1, %v1241_v11 }
   0x3   :  { %v1124_v7 = vpack.c.bf16 %v30_v4, %v29_v2  ;;  %1029 = vmatprep.mubr.msk.f32.mxu0 %vm38_vm0, %v25_v5  ;;  %v130_v8 = vld [vmem:[%s1456_s2] sm:$0xff]  ;;  %v132_v10 = vld [vmem:[%s1456_s2 + $0x10] sm:$0xff]  ;;  %24 = vst.msk [vmem:[#allocation3] sm:$0x3] %vm22_vm1, %v1241_v11  ;;  %v133_v13 = vld [vmem:[%s1456_s2 + $0x18] sm:$0xff] }
   0x4   :  { %1121 = vmatprep.subr.bf16.mxu0 %v1120_v3  ;;  %v1303_v12 = vpack.c.bf16 %v131_v9, %v130_v8 }
   0x5   :  { %9 = vsyncpa [#allocation6], 0  ;;  %1123 = vmatpush3.bf16.msra.mxu0 %v1120_v3  ;;  %v1309_v14 = vpack.c.bf16 %v133_v13, %v132_v10  ;;  %v26_v15 = vld [vmem:[%s1454_s0 + $0x8] sm:$0xff]  ;;  %v964_v17 = vld [vmem:[%s1457_s3] ss:$0 sm:$0xff]  ;;  %v122_v23 = vlaneseq  ;;  %s1242_s3 = smov 64  }
   0x6   :  { %1125 = vmatprep.subr.bf16.mxu0 %v1124_v7  ;;  %1130 = vmatpush3.bf16.msra.mxu1 %v1303_v12  ;;  %s1243_s8 = smov 32   ;;  %s1244_s9 = smov 96  }
   0x7   :  { %1131 = vmatprep.subr.bf16.mxu1 %v1239_v6  ;;  %v123_v25 = vand.u32 127, %v122_v23  ;;  %s1245_s10 = smov [#allocation5]  }
   0x8   :  { %s956_s11 = sshll.u32 %s1245_s10, 4  ;;  %s957_s11 = int_to_ptr.vmem [resolvable:$true] %s956_s11 }
   0x9   :  { %1127 = vmatpush3.bf16.msra.mxu0 %v1124_v7  ;;  %v127_v16 = vld [vmem:[#allocation2] sm:$0x3]  ;;  %vm124_vm3 = vcmp.ge.s32.totalorder %v123_v25, 64  ;;  %vm125_vm4 = vcmp.lt.s32.totalorder %v123_v25, 96  ;;  %s1215_s12 = scalar_lea.vmem %s957_s11, 32  ;;  %p1220_p1 = scmp.lt.s32.totalorder %s957_s11, %s957_s11 }
   0xa   :  { %1133 = vmatpush3.bf16.msra.mxu1 %v1309_v14  ;;  %1134 = vmatprep.subr.bf16.mxu0 %v1239_v6  ;;  %vm1335_vm5 = vmand %vm124_vm3, %vm125_vm4  ;;  %v128_v35 = vld [vmem:[#allocation3] sm:$0x3]  ;;  %p1216_p0 = scmp.ne.s32.totalorder %s957_s11, %s1215_s12  ;;  %p1221_p2 = scmp.lt.s32.totalorder %s1215_s12, %s1215_s12 }
   0xb   :  { %1140 = vmatprep.subr.bf16.mxu1 %v1239_v6 }
   0xc   :  { %1030 = vmatmul.mubr.msk.f32.vlgmr.msra.gmra.mrb[0].mxu0 %vm38_vm0, %v26_v15  ;;  %p1222_p3 = por %p1221_p2, %p1220_p1 }
   0xd   :  { %1041 = vmatmul.mubr.msk.f32.vlgmr.msra.gmra.mrb[0].mxu1 %vm38_vm0, %v127_v16  ;;  %1136 = vmatpush3.bf16.msra.mxu0 %v1303_v12 }
   0xe   :  { %1137 = vmatprep.subr.bf16.mxu0 %v1239_v6  ;;  %1051 = vmatprep.mubr.msk.f32.mxu0 %vm1240_vm2, %v1241_v11  ;;  %p1223_p4 = pnand %p1222_p3, %p1216_p0 }
   0xf   :  { %1142 = vmatpush3.bf16.msra.mxu1 %v1303_v12  ;;  %1062 = vmatprep.mubr.msk.f32.mxu1 %vm1240_vm2, %v1241_v11 }
  0x10   :  { %1143 = vmatprep.subr.bf16.mxu1 %v1239_v6 }
  0x11   :  { %1139 = vmatpush3.bf16.msra.mxu0 %v1309_v14 }
  0x12   :  { %1146 = vmatprep.subr.bf16.mxu0 %v1239_v6 }
  0x13   :  { %1145 = vmatpush3.bf16.msra.mxu1 %v1309_v14 }
  0x14   :  { %1152 = vmatprep.subr.bf16.mxu1 %v1239_v6 }
  0xdf   :  { %v1031_v18 = vpop.f32.mrb[0].mxu0 }
  0xe0   :  { %v117_v19 = vadd.f32 %v1031_v18, %v964_v17  ;;  %v111_v20 = vpop.f32.mrb[1].mxu0  ;;  %v203_v21 = vpop.f32.mrb[0].mxu1 }
  0xe1   :  { %v112_v22 = vadd.f32 %v964_v17, %v111_v20  ;;  %v1042_v24 = vpop.f32.mrb[1].mxu1 }
  0xe2   :  { %121 = vst [vmem:[#allocation4 + $0x8] sm:$0xff] %v117_v19 }
  0xe3   :  { %120 = vst [vmem:[#allocation4] sm:$0xff] %v112_v22 }
  0xea   :  { %v129_v26 = vld [vmem:[#allocation4] sm:$0x3]  ;;  %v235_v46 = vld [vmem:[#allocation4 + $0x2] sm:$0x3]  ;;  %v335_v1 = vld [vmem:[#allocation4 + $0x4] sm:$0x3] }
  0xeb   :  { %v207_v27 = vadd.f32 %v203_v21, %v129_v26  ;;  %v435_v24 = vld [vmem:[#allocation4 + $0x6] sm:$0x3] }
  0xed   :  { %v208_v29 = vmul.f32 0.5, %v207_v27 }
  0xef   :  { %v209_v30 = vsel %vm1335_vm5, %v207_v27, %v208_v29 }
  0xf0   :  { %1183 = vtanh.f32 %v209_v30 }
  0xfa   :  { %v1184_v31 = vpop.eup %1183 }
  0xfb   :  { %v211_v32 = vadd.f32 1.0, %v1184_v31 }
  0xfd   :  { %v212_v33 = vmul.f32 0.5, %v211_v32 }
  0xff   :  { %v213_v34 = vsel %vm1335_vm5, %v1184_v31, %v212_v33 }
 0x100   :  { %220 = vrot.lane.b32.xlu0 %v213_v34, %s1242_s3 }
 0x104   :  { %215 = vrot.lane.b32.xlu0 %v128_v35, %s1243_s8 }
 0x172   :  { %v221_v36 = vpop.permute.xlu0 %220 }
 0x173   :  { %v223_v37 = vmul.f32 %v221_v36, %v213_v34 }
 0x175   :  { %225 = vrot.lane.b32.xlu1 %v223_v37, %s1243_s8 }
 0x176   :  { %v216_v38 = vpop.permute.xlu0 %215 }
 0x177   :  { %v218_v39 = vmul.f32 %v216_v38, %v213_v34 }
 0x1e7   :  { %v226_v40 = vpop.permute.xlu1 %225 }
 0x1e8   :  { %v228_v41 = vadd.f32 %v226_v40, %v218_v39 }
 0x1ea   :  { %1185 = vtanh.f32 %v228_v41 }
 0x1f4   :  { %v1186_v42 = vpop.eup %1185 }
 0x1f5   :  { %231 = vrot.lane.b32.xlu1 %v1186_v42, %s1242_s3 }
 0x267   :  { %v232_v43 = vpop.permute.xlu1 %231 }
 0x268   :  { %v234_v44 = vmul.f32 %v232_v43, %v213_v34 }
 0x26a   :  { %237 = vrot.lane.b32.xlu0 %v234_v44, %s1243_s8  ;;  %v535_v44 = vld [vmem:[#allocation4 + $0x8] sm:$0x3] }
 0x2dc   :  { %v238_v45 = vpop.permute.xlu0 %237 }
 0x2dd   :  { %1052 = vmatmul.mubr.msk.f32.vlgmr.msra.gmra.mrb[2].mxu0 %vm38_vm0, %v238_v45 }
 0x2de   :  { %1148 = vmatpush3.bf16.msra.mxu0 %v1303_v12  ;;  %1073 = vmatprep.mubr.msk.f32.mxu0 %vm1240_vm2, %v1241_v11 }
 0x2df   :  { %1149 = vmatprep.subr.bf16.mxu0 %v1239_v6 }
 0x2e2   :  { %1151 = vmatpush3.bf16.msra.mxu0 %v1309_v14 }
 0x2e3   :  { %1158 = vmatprep.subr.bf16.mxu0 %v1239_v6 }
 0x3b0   :  { %v307_v47 = vpop.f32.mrb[2].mxu0 }
 0x3b1   :  { %v311_v48 = vadd.f32 %v307_v47, %v235_v46  ;;  %v1053_v49 = vpop.f32.mrb[3].mxu0 }
 0x3b3   :  { %v312_v50 = vmul.f32 0.5, %v311_v48 }
 0x3b5   :  { %v313_v51 = vsel %vm1335_vm5, %v311_v48, %v312_v50 }
 0x3b6   :  { %1187 = vtanh.f32 %v313_v51 }
 0x3c0   :  { %v1188_v52 = vpop.eup %1187 }
 0x3c1   :  { %v315_v53 = vadd.f32 1.0, %v1188_v52 }
 0x3c3   :  { %v316_v54 = vmul.f32 0.5, %v315_v53 }
 0x3c5   :  { %v317_v55 = vsel %vm1335_vm5, %v1188_v52, %v316_v54 }
 0x3c6   :  { %320 = vrot.lane.b32.xlu1 %v317_v55, %s1242_s3  ;;  %v318_v58 = vmul.f32 %v317_v55, %v228_v41 }
 0x438   :  { %v321_v56 = vpop.permute.xlu1 %320 }
 0x439   :  { %v323_v57 = vmul.f32 %v321_v56, %v317_v55 }
 0x43b   :  { %325 = vrot.lane.b32.xlu0 %v323_v57, %s1243_s8 }
 0x4ad   :  { %v326_v59 = vpop.permute.xlu0 %325 }
 0x4ae   :  { %v328_v60 = vadd.f32 %v326_v59, %v318_v58 }
 0x4b0   :  { %1189 = vtanh.f32 %v328_v60 }
 0x4ba   :  { %v1190_v61 = vpop.eup %1189 }
 0x4bb   :  { %331 = vrot.lane.b32.xlu1 %v1190_v61, %s1242_s3 }
 0x52d   :  { %v332_v62 = vpop.permute.xlu1 %331 }
 0x52e   :  { %v334_v63 = vmul.f32 %v332_v62, %v317_v55 }
 0x530   :  { %337 = vrot.lane.b32.xlu0 %v334_v63, %s1243_s8  ;;  %v635_v63 = vld [vmem:[#allocation4 + $0xa] sm:$0x3] }
 0x5a2   :  { %v338_v0 = vpop.permute.xlu0 %337 }
 0x5a3   :  { %1063 = vmatmul.mubr.msk.f32.vlgmr.msra.gmra.mrb[2].mxu1 %vm38_vm0, %v338_v0 }
 0x5a4   :  { %1154 = vmatpush3.bf16.msra.mxu1 %v1303_v12  ;;  %1084 = vmatprep.mubr.msk.f32.mxu1 %vm1240_vm2, %v1241_v11 }
 0x5a5   :  { %1155 = vmatprep.subr.bf16.mxu1 %v1239_v6 }
 0x5a8   :  { %1157 = vmatpush3.bf16.msra.mxu1 %v1309_v14 }
 0x5a9   :  { %1164 = vmatprep.subr.bf16.mxu1 %v1239_v6 }
 0x676   :  { %v407_v2 = vpop.f32.mrb[2].mxu1 }
 0x677   :  { %v411_v3 = vadd.f32 %v407_v2, %v335_v1  ;;  %v1064_v4 = vpop.f32.mrb[3].mxu1 }
 0x679   :  { %v412_v5 = vmul.f32 0.5, %v411_v3 }
 0x67b   :  { %v413_v7 = vsel %vm1335_vm5, %v411_v3, %v412_v5 }
 0x67c   :  { %1191 = vtanh.f32 %v413_v7 }
 0x686   :  { %v1192_v8 = vpop.eup %1191 }
 0x687   :  { %v415_v9 = vadd.f32 1.0, %v1192_v8 }
 0x689   :  { %v416_v10 = vmul.f32 0.5, %v415_v9 }
 0x68b   :  { %v417_v13 = vsel %vm1335_vm5, %v1192_v8, %v416_v10 }
 0x68c   :  { %420 = vrot.lane.b32.xlu1 %v417_v13, %s1242_s3  ;;  %v418_v17 = vmul.f32 %v417_v13, %v328_v60 }
 0x6fe   :  { %v421_v15 = vpop.permute.xlu1 %420 }
 0x6ff   :  { %v423_v16 = vmul.f32 %v421_v15, %v417_v13 }
 0x701   :  { %425 = vrot.lane.b32.xlu0 %v423_v16, %s1243_s8 }
 0x773   :  { %v426_v18 = vpop.permute.xlu0 %425 }
 0x774   :  { %v428_v19 = vadd.f32 %v426_v18, %v418_v17  ;;  %v735_v18 = vld [vmem:[#allocation4 + $0xc] sm:$0x3] }
 0x776   :  { %1193 = vtanh.f32 %v428_v19 }
 0x780   :  { %v1194_v20 = vpop.eup %1193 }
 0x781   :  { %431 = vrot.lane.b32.xlu1 %v1194_v20, %s1242_s3 }
 0x7f3   :  { %v432_v21 = vpop.permute.xlu1 %431 }
 0x7f4   :  { %v434_v22 = vmul.f32 %v432_v21, %v417_v13 }
 0x7f6   :  { %437 = vrot.lane.b32.xlu0 %v434_v22, %s1243_s8 }
 0x868   :  { %v438_v23 = vpop.permute.xlu0 %437 }
 0x869   :  { %1074 = vmatmul.mubr.msk.f32.vlgmr.msra.gmra.mrb[4].mxu0 %vm38_vm0, %v438_v23 }
 0x86a   :  { %1160 = vmatpush3.bf16.msra.mxu0 %v1303_v12  ;;  %1095 = vmatprep.mubr.msk.f32.mxu0 %vm1240_vm2, %v1241_v11 }
 0x86b   :  { %1161 = vmatprep.subr.bf16.mxu0 %v1239_v6 }
 0x86e   :  { %1163 = vmatpush3.bf16.msra.mxu0 %v1309_v14 }
 0x86f   :  { %1170 = vmatprep.subr.bf16.mxu0 %v1239_v6 }
 0x93c   :  { %v507_v25 = vpop.f32.mrb[4].mxu0 }
 0x93d   :  { %v511_v26 = vadd.f32 %v507_v25, %v435_v24  ;;  %v1075_v27 = vpop.f32.mrb[5].mxu0 }
 0x93f   :  { %v512_v29 = vmul.f32 0.5, %v511_v26 }
 0x941   :  { %v513_v30 = vsel %vm1335_vm5, %v511_v26, %v512_v29 }
 0x942   :  { %1195 = vtanh.f32 %v513_v30 }
 0x94c   :  { %v1196_v31 = vpop.eup %1195 }
 0x94d   :  { %v515_v32 = vadd.f32 1.0, %v1196_v31 }
 0x94f   :  { %v516_v33 = vmul.f32 0.5, %v515_v32 }
 0x951   :  { %v517_v34 = vsel %vm1335_vm5, %v1196_v31, %v516_v33 }
 0x952   :  { %520 = vrot.lane.b32.xlu1 %v517_v34, %s1242_s3  ;;  %v518_v37 = vmul.f32 %v517_v34, %v428_v19 }
 0x9c4   :  { %v521_v35 = vpop.permute.xlu1 %520 }
 0x9c5   :  { %v523_v36 = vmul.f32 %v521_v35, %v517_v34 }
 0x9c7   :  { %525 = vrot.lane.b32.xlu0 %v523_v36, %s1243_s8 }
 0xa39   :  { %v526_v38 = vpop.permute.xlu0 %525 }
 0xa3a   :  { %v528_v39 = vadd.f32 %v526_v38, %v518_v37  ;;  %v835_v38 = vld [vmem:[#allocation4 + $0xe] sm:$0x3] }
 0xa3c   :  { %1197 = vtanh.f32 %v528_v39 }
 0xa46   :  { %v1198_v40 = vpop.eup %1197 }
 0xa47   :  { %531 = vrot.lane.b32.xlu1 %v1198_v40, %s1242_s3 }
 0xab9   :  { %v532_v41 = vpop.permute.xlu1 %531 }
 0xaba   :  { %v534_v42 = vmul.f32 %v532_v41, %v517_v34 }
 0xabc   :  { %537 = vrot.lane.b32.xlu0 %v534_v42, %s1243_s8 }
 0xb2e   :  { %v538_v43 = vpop.permute.xlu0 %537 }
 0xb2f   :  { %1085 = vmatmul.mubr.msk.f32.vlgmr.msra.gmra.mrb[4].mxu1 %vm38_vm0, %v538_v43 }
 0xb30   :  { %1166 = vmatpush3.bf16.msra.mxu1 %v1303_v12  ;;  %1106 = vmatprep.mubr.msk.f32.mxu1 %vm1240_vm2, %v1241_v11 }
 0xb31   :  { %1167 = vmatprep.subr.bf16.mxu1 %v1239_v6 }
 0xb34   :  { %1169 = vmatpush3.bf16.msra.mxu1 %v1309_v14 }
 0xc02   :  { %v607_v45 = vpop.f32.mrb[4].mxu1 }
 0xc03   :  { %v611_v46 = vadd.f32 %v607_v45, %v535_v44  ;;  %v1086_v47 = vpop.f32.mrb[5].mxu1 }
 0xc05   :  { %v612_v48 = vmul.f32 0.5, %v611_v46 }
 0xc07   :  { %v613_v49 = vsel %vm1335_vm5, %v611_v46, %v612_v48 }
 0xc08   :  { %1199 = vtanh.f32 %v613_v49 }
 0xc12   :  { %v1200_v50 = vpop.eup %1199 }
 0xc13   :  { %v615_v51 = vadd.f32 1.0, %v1200_v50 }
 0xc15   :  { %v616_v52 = vmul.f32 0.5, %v615_v51 }
 0xc17   :  { %v617_v53 = vsel %vm1335_vm5, %v1200_v50, %v616_v52 }
 0xc18   :  { %620 = vrot.lane.b32.xlu1 %v617_v53, %s1242_s3  ;;  %v618_v56 = vmul.f32 %v617_v53, %v528_v39 }
 0xc8a   :  { %v621_v54 = vpop.permute.xlu1 %620 }
 0xc8b   :  { %v623_v55 = vmul.f32 %v621_v54, %v617_v53 }
 0xc8d   :  { %625 = vrot.lane.b32.xlu0 %v623_v55, %s1243_s8 }
 0xcff   :  { %v626_v57 = vpop.permute.xlu0 %625 }
 0xd00   :  { %v628_v58 = vadd.f32 %v626_v57, %v618_v56 }
 0xd02   :  { %1201 = vtanh.f32 %v628_v58 }
 0xd0c   :  { %v1202_v59 = vpop.eup %1201 }
 0xd0d   :  { %631 = vrot.lane.b32.xlu1 %v1202_v59, %s1242_s3 }
 0xd7f   :  { %v632_v60 = vpop.permute.xlu1 %631 }
 0xd80   :  { %v634_v61 = vmul.f32 %v632_v60, %v617_v53 }
 0xd82   :  { %637 = vrot.lane.b32.xlu0 %v634_v61, %s1243_s8 }
 0xdf4   :  { %v638_v62 = vpop.permute.xlu0 %637 }
 0xdf5   :  { %1096 = vmatmul.mubr.msk.f32.vlgmr.msra.gmra.mrb[6].mxu0 %vm38_vm0, %v638_v62 }
 0xdf6   :  { %1172 = vmatpush3.bf16.msra.mxu0 %v1303_v12  ;;  %1117 = vmatprep.mubr.msk.f32.mxu0 %vm1240_vm2, %v1241_v11 }
 0xdf7   :  { %1173 = vmatprep.subr.bf16.mxu0 %v1239_v6 }
 0xdfa   :  { %1175 = vmatpush3.bf16.msra.mxu0 %v1309_v14 }
 0xec8   :  { %v707_v0 = vpop.f32.mrb[6].mxu0 }
 0xec9   :  { %v711_v1 = vadd.f32 %v707_v0, %v635_v63  ;;  %v1097_v2 = vpop.f32.mrb[7].mxu0 }
 0xecb   :  { %v712_v3 = vmul.f32 0.5, %v711_v1 }
 0xecd   :  { %v713_v4 = vsel %vm1335_vm5, %v711_v1, %v712_v3 }
 0xece   :  { %1203 = vtanh.f32 %v713_v4 }
 0xed8   :  { %v1204_v5 = vpop.eup %1203 }
 0xed9   :  { %v715_v7 = vadd.f32 1.0, %v1204_v5 }
 0xedb   :  { %v716_v8 = vmul.f32 0.5, %v715_v7 }
 0xedd   :  { %v717_v12 = vsel %vm1335_vm5, %v1204_v5, %v716_v8 }
 0xede   :  { %720 = vrot.lane.b32.xlu1 %v717_v12, %s1242_s3  ;;  %v718_v14 = vmul.f32 %v717_v12, %v628_v58 }
 0xf50   :  { %v721_v6 = vpop.permute.xlu1 %720 }
 0xf51   :  { %v723_v11 = vmul.f32 %v721_v6, %v717_v12 }
 0xf53   :  { %725 = vrot.lane.b32.xlu0 %v723_v11, %s1243_s8 }
 0xfc5   :  { %v726_v9 = vpop.permute.xlu0 %725 }
 0xfc6   :  { %v728_v10 = vadd.f32 %v726_v9, %v718_v14 }
 0xfc8   :  { %1205 = vtanh.f32 %v728_v10 }
 0xfd2   :  { %v1206_v13 = vpop.eup %1205 }
 0xfd3   :  { %731 = vrot.lane.b32.xlu1 %v1206_v13, %s1242_s3 }
0x1045   :  { %v732_v15 = vpop.permute.xlu1 %731 }
0x1046   :  { %v734_v16 = vmul.f32 %v732_v15, %v717_v12 }
0x1048   :  { %737 = vrot.lane.b32.xlu0 %v734_v16, %s1243_s8 }
0x10ba   :  { %v738_v17 = vpop.permute.xlu0 %737 }
0x10bb   :  { %1107 = vmatmul.mubr.msk.f32.vlgmr.msra.gmra.mrb[6].mxu1 %vm38_vm0, %v738_v17 }
0x118e   :  { %v807_v19 = vpop.f32.mrb[6].mxu1 }
0x118f   :  { %v811_v20 = vadd.f32 %v807_v19, %v735_v18  ;;  %v1108_v21 = vpop.f32.mrb[7].mxu1 }
0x1191   :  { %v812_v22 = vmul.f32 0.5, %v811_v20 }
0x1193   :  { %v813_v23 = vsel %vm1335_vm5, %v811_v20, %v812_v22 }
0x1194   :  { %1207 = vtanh.f32 %v813_v23 }
0x119e   :  { %v1208_v24 = vpop.eup %1207 }
0x119f   :  { %v815_v25 = vadd.f32 1.0, %v1208_v24 }
0x11a1   :  { %v816_v26 = vmul.f32 0.5, %v815_v25 }
0x11a3   :  { %v817_v27 = vsel %vm1335_vm5, %v1208_v24, %v816_v26 }
0x11a4   :  { %820 = vrot.lane.b32.xlu1 %v817_v27, %s1242_s3  ;;  %v818_v31 = vmul.f32 %v817_v27, %v728_v10 }
0x1216   :  { %v821_v29 = vpop.permute.xlu1 %820 }
0x1217   :  { %v823_v30 = vmul.f32 %v821_v29, %v817_v27 }
0x1219   :  { %825 = vrot.lane.b32.xlu0 %v823_v30, %s1243_s8 }
0x128b   :  { %v826_v32 = vpop.permute.xlu0 %825 }
0x128c   :  { %v828_v33 = vadd.f32 %v826_v32, %v818_v31 }
0x128e   :  { %1209 = vtanh.f32 %v828_v33 }
0x1298   :  { %v1210_v34 = vpop.eup %1209 }
0x1299   :  { %831 = vrot.lane.b32.xlu1 %v1210_v34, %s1242_s3 }
0x130b   :  { %v832_v35 = vpop.permute.xlu1 %831 }
0x130c   :  { %v834_v36 = vmul.f32 %v832_v35, %v817_v27 }
0x130e   :  { %837 = vrot.lane.b32.xlu0 %v834_v36, %s1243_s8 }
0x1380   :  { %v838_v37 = vpop.permute.xlu0 %837 }
0x1381   :  { %1118 = vmatmul.mubr.msk.f32.vlgmr.msra.gmra.mrb[8].mxu0 %vm38_vm0, %v838_v37 }
0x1454   :  { %v907_v39 = vpop.f32.mrb[8].mxu0 }
0x1455   :  { %v911_v40 = vadd.f32 %v907_v39, %v835_v38  ;;  %v1119_v41 = vpop.f32.mrb[9].mxu0 }
0x1457   :  { %v912_v42 = vmul.f32 0.5, %v911_v40 }
0x1459   :  { %v913_v43 = vsel %vm1335_vm5, %v911_v40, %v912_v42 }
0x145a   :  { %1211 = vtanh.f32 %v913_v43 }
0x1464   :  { %v1212_v44 = vpop.eup %1211 }
0x1465   :  { %v915_v45 = vadd.f32 1.0, %v1212_v44 }
0x1467   :  { %v916_v46 = vmul.f32 0.5, %v915_v45 }
0x1469   :  { %v917_v47 = vsel %vm1335_vm5, %v1212_v44, %v916_v46 }
0x146a   :  { %920 = vrot.lane.b32.xlu1 %v917_v47, %s1242_s3  ;;  %v918_v50 = vmul.f32 %v917_v47, %v828_v33 }
0x14dc   :  { %v921_v48 = vpop.permute.xlu1 %920 }
0x14dd   :  { %v923_v49 = vmul.f32 %v921_v48, %v917_v47 }
0x14df   :  { %925 = vrot.lane.b32.xlu0 %v923_v49, %s1243_s8 }
0x1551   :  { %v926_v51 = vpop.permute.xlu0 %925 }
0x1552   :  { %v928_v52 = vadd.f32 %v926_v51, %v918_v50 }
0x1554   :  { %1213 = vtanh.f32 %v928_v52 }
0x155e   :  { %v1214_v53 = vpop.eup %1213 }
0x155f   :  { %931 = vrot.lane.b32.xlu1 %v1214_v53, %s1242_s3 }
0x1563   :  { %942 = vrot.lane.b32.xlu1 %v928_v52, %s1244_s9 }
0x15d1   :  { %v932_v54 = vpop.permute.xlu1 %931 }
0x15d2   :  { %v934_v55 = vmul.f32 %v932_v54, %v917_v47 }
0x15d4   :  { %936 = vrot.lane.b32.xlu0 %v934_v55, %s1243_s8 }
0x15d5   :  { %v943_v28 = vpop.permute.xlu1 %942 }
0x15d6   :  { %945 = vst.msk [vmem:[#allocation3] sm:$0x3] %vm22_vm1, %v943_v28 }
0x1646   :  { %v937_v56 = vpop.permute.xlu0 %936 }
0x1647   :  { %940 = vst.msk [vmem:[#allocation2] sm:$0x3] %vm22_vm1, %v937_v56  ;;  %949 = vst.msk [vmem:[#allocation5] sm:$0x3] %vm22_vm1, %v937_v56 }
0x1648   :  { %1226 = shalt.err (!%p1223_p4)
}
0x1649   :  { %s1227_s15 = scalar_lea.hbm %s1458_s4, 32 }
0x164a   :  { %p1228_p5 = scmp.ne.s32.totalorder %s1458_s4, %s1227_s15  ;;  %p1231_p6 = scmp.lt.u32.totalorder %s1227_s15, %s1458_s4 }
0x164c   :  { %p1233_p7 = pnand %p1231_p6, %p1228_p5 }
0x164e   :  { %1236 = shalt.err (!%p1233_p7)
}
0x164f   :  { %959 = dma.vmem_to_hbm [thread:$0]  %s957_s11, 32, %s1458_s4, [#allocation6]  }
0x1650   :  { %1237 = dma.done.wait [#allocation6], 32  }
0x1651   :  { %1238 = vsyncadd [#allocation6], 4294967264 }
0x1652   :  { %963 = vsyncpa [#allocation6], 1 }

</bundles_post_ra>
